<compile_context>
chip_gen: v7x
topology: tpu7x:2x2x1
jax: 0.10.0
libtpu: 0.0.40
codegen_flags: <defaults>
</compile_context>

<pallas_src>
import functools

import jax
import jax.numpy as jnp
from jax.experimental import pallas as pl
from jax.experimental.pallas import tpu as pltpu

_VMEM_LIMIT_BYTES = 32 * 1024 * 1024      # safe on v5e/v6e/v7x scoped VMEM
_RESIDENT_PN_BYTES = 8 * 1024 * 1024      # budget for VMEM-resident P_neigh


def _round_up(x, m):
    return ((x + m - 1) // m) * m


# ----------------------------------------------------------------------------
# Kernel 1: fused projection + bias
#   P = H @ [W_self | W_neigh]  (one MXU call, full 256-wide N dim)
#   P_self = P[:, :Fo] + b ;  P_neigh = P[:, Fo:]
# ----------------------------------------------------------------------------
def _proj_kernel(h_ref, w_ref, b_ref, ps_ref, pn_ref):
    fo = ps_ref.shape[1]
    p = jnp.dot(h_ref[...], w_ref[...], preferred_element_type=jnp.float32)
    ps_ref[...] = (p[:, :fo] + b_ref[...]).astype(ps_ref.dtype)
    pn_ref[...] = p[:, fo:].astype(pn_ref.dtype)


# ----------------------------------------------------------------------------
# Kernel 2: tiled aggregation + combine
#   acc(i) += A01(i,k) @ P_neigh(k)                (reduction over k, f32 acc)
#   out(i)  = relu?( inv_deg(i) * acc(i) + P_self(i) )   on the last k step
# ----------------------------------------------------------------------------
def _agg_kernel(a_ref, pn_ref, ps_ref, inv_ref, out_ref, acc_ref, *,
                apply_relu, resident, tk):
    k = pl.program_id(1)

    @pl.when(k == 0)
    def _():
        acc_ref[...] = jnp.zeros_like(acc_ref)

    if resident:
        # P_neigh lives fully in VMEM (constant block index); slice the k-tile.
        off = pl.multiple_of(k * tk, tk)
        pn = pn_ref[pl.ds(off, tk), :]
    else:
        pn = pn_ref[...]

    a = a_ref[...].astype(pn.dtype)  # bf16 0/1 -> exact in any compute dtype
    acc_ref[...] += jnp.dot(a, pn, preferred_element_type=jnp.float32)

    @pl.when(k == pl.num_programs(1) - 1)
    def _():
        out = inv_ref[...] * acc_ref[...] + ps_ref[...].astype(jnp.float32)
        if apply_relu:
            out = jnp.maximum(out, 0.0)
        out_ref[...] = out.astype(out_ref.dtype)


# ----------------------------------------------------------------------------
# One SAGEConv layer on padded arrays.
#   a_bin:   (N_p, N_p)  binary adjacency, bf16, zero-padded (cast ONCE)
#   inv_deg: (N_p, 1)    f32 per-row 1/deg (0 for zero-degree / padded rows)
#   h:       (N_p, Fi_p) node features
#   w_cat:   (Fi_p, 2*Fo_p) = [W_self | W_neigh], compute dtype, zero-padded
#   b_p:     (1, Fo_p)   f32 bias, zero-padded
# returns (N_p, Fo_p) in out_dtype
# ----------------------------------------------------------------------------
def sage_layer(a_bin, inv_deg, h, w_cat, b_p, *, apply_relu, compute_dtype,
               out_dtype, tm, tk):
    n_p = a_bin.shape[0]
    fi_p = h.shape[1]
    two_fo_p = w_cat.shape[1]
    fo_p = two_fo_p // 2
    c_bytes = jnp.dtype(compute_dtype).itemsize

    # ---- pass 1: fused projection (row-tiled, "parallel") -------------------
    proj_cost = pl.CostEstimate(
        flops=2 * n_p * fi_p * two_fo_p,
        transcendentals=0,
        bytes_accessed=c_bytes * (n_p * fi_p + fi_p * two_fo_p + n_p * two_fo_p)
        + 4 * fo_p,
    )
    ps, pn = pl.pallas_call(
        _proj_kernel,
        out_shape=(
            jax.ShapeDtypeStruct((n_p, fo_p), compute_dtype),
            jax.ShapeDtypeStruct((n_p, fo_p), compute_dtype),
        ),
        grid=(n_p // tm,),
        in_specs=[
            pl.BlockSpec((tm, fi_p), lambda i: (i, 0)),         # H row tile
            pl.BlockSpec((fi_p, two_fo_p), lambda i: (0, 0)),   # [W_self|W_neigh]
            pl.BlockSpec((1, fo_p), lambda i: (0, 0)),          # bias
        ],
        out_specs=(
            pl.BlockSpec((tm, fo_p), lambda i: (i, 0)),         # P_self + b
            pl.BlockSpec((tm, fo_p), lambda i: (i, 0)),         # P_neigh
        ),
        compiler_params=pltpu.CompilerParams(
            dimension_semantics=("parallel",),
            vmem_limit_bytes=_VMEM_LIMIT_BYTES,
        ),
        cost_estimate=proj_cost,
    )(h.astype(compute_dtype), w_cat, b_p)

    # ---- pass 2: aggregation over binary A with reduction grid axis ---------
    # Keep P_neigh fully VMEM-resident when it fits the budget (avoids the
    # N^2*fo_p/tm re-read); otherwise stream it per k tile.
    resident = (n_p * fo_p * c_bytes) <= _RESIDENT_PN_BYTES
    if resident:
        pn_spec = pl.BlockSpec((n_p, fo_p), lambda i, k: (0, 0))
    else:
        pn_spec = pl.BlockSpec((tk, fo_p), lambda i, k: (k, 0))

    agg_cost = pl.CostEstimate(
        flops=2 * n_p * n_p * fo_p,
        transcendentals=0,
        bytes_accessed=(
            a_bin.dtype.itemsize * n_p * n_p          # A (bf16)
            + c_bytes * 2 * n_p * fo_p                # P_neigh + P_self
            + 4 * n_p                                 # inv_deg (f32)
            + jnp.dtype(out_dtype).itemsize * n_p * fo_p
        ),
    )
    kernel = functools.partial(_agg_kernel, apply_relu=apply_relu,
                               resident=resident, tk=tk)
    out = pl.pallas_call(
        kernel,
        out_shape=jax.ShapeDtypeStruct((n_p, fo_p), out_dtype),
        grid=(n_p // tm, n_p // tk),
        in_specs=[
            pl.BlockSpec((tm, tk), lambda i, k: (i, k)),        # A01 tile
            pn_spec,                                            # P_neigh
            pl.BlockSpec((tm, fo_p), lambda i, k: (i, 0)),      # P_self
            pl.BlockSpec((tm, 1), lambda i, k: (i, 0)),         # 1/deg
        ],
        out_specs=pl.BlockSpec((tm, fo_p), lambda i, k: (i, 0)),
        scratch_shapes=[pltpu.VMEM((tm, fo_p), jnp.float32)],
        compiler_params=pltpu.CompilerParams(
            dimension_semantics=("parallel", "arbitrary"),
            vmem_limit_bytes=_VMEM_LIMIT_BYTES,
        ),
        cost_estimate=agg_cost,
    )(a_bin, pn, ps, inv_deg)
    return out


# ----------------------------------------------------------------------------
# Parameter setup + layer loop (glue; compute is in the Pallas kernels)
# ----------------------------------------------------------------------------
def init_params(key, in_feats, n_hidden, n_classes, n_layers):
    dims = [in_feats] + [n_hidden] * (n_layers - 1) + [n_classes]
    params = []
    for l in range(n_layers):
        f_in, f_out = dims[l], dims[l + 1]
        key, k1, k2, k3 = jax.random.split(key, 4)
        scale = 1.0 / jnp.sqrt(jnp.float32(f_in))
        params.append({
            "w_self": jax.random.normal(k1, (f_in, f_out), jnp.float32) * scale,
            "w_neigh": jax.random.normal(k2, (f_in, f_out), jnp.float32) * scale,
            "b": jax.random.normal(k3, (1, f_out), jnp.float32) * 0.01,
        })
    return params


def _tiling_for(n):
    """Node padding + (tm, tk): pad only to 128, >=2 row tiles for megacore."""
    n_p = _round_up(n, 128)
    # Row ('parallel') tile: largest that divides n_p while leaving >= 2 row
    # tiles so both v7x TensorCores get work; tiny graphs fall back to one tile.
    tm = n_p
    for cand in (512, 256, 128, 64):
        if n_p % cand == 0 and n_p // cand >= 2:
            tm = cand
            break
    # Reduction tile over columns of A (always divides n_p since 128 | n_p).
    tk = n_p
    for cand in (512, 256, 128):
        if n_p % cand == 0:
            tk = cand
            break
    return n_p, tm, tk


def model_forward(params, adj, x, *, compute_dtype=jnp.float32):
    """Mirrors Model.forward: conv -> activation -> dropout(identity, eval)."""
    n, in_feats = x.shape
    n_classes = params[-1]["w_self"].shape[1]
    n_p, tm, tk = _tiling_for(n)

    # Mean aggregator = diag(1/deg) @ (A01 @ h).  Binary adjacency is padded
    # and cast to bf16 exactly ONCE (0/1 are exact in bf16 -> no accuracy loss,
    # half the HBM bytes of the dominant pass); the f32 1/deg scale is applied
    # in the aggregation finalize.  Padded rows/cols provably stay zero /
    # never contaminate real rows.
    deg = jnp.sum(adj, axis=1, keepdims=True)
    inv_deg = jnp.where(deg > 0, 1.0 / jnp.maximum(deg, 1.0), 0.0)
    a_bin = jnp.pad((adj > 0).astype(jnp.bfloat16),
                    ((0, n_p - n), (0, n_p - n)))
    inv_deg_p = jnp.pad(inv_deg.astype(jnp.float32), ((0, n_p - n), (0, 0)))

    fi0_p = _round_up(in_feats, 128)
    h = jnp.pad(x, ((0, n_p - n), (0, fi0_p - in_feats)))

    n_layers = len(params)
    for l, p_l in enumerate(params):
        f_in, f_out = p_l["w_self"].shape
        fi_p = _round_up(f_in, 128)
        fo_p = _round_up(f_out, 128)
        w_cat = jnp.concatenate(
            [
                jnp.pad(p_l["w_self"], ((0, fi_p - f_in), (0, fo_p - f_out))),
                jnp.pad(p_l["w_neigh"], ((0, fi_p - f_in), (0, fo_p - f_out))),
            ],
            axis=1,
        ).astype(compute_dtype)
        b_p = jnp.pad(p_l["b"], ((0, 0), (0, fo_p - f_out))).astype(jnp.float32)
        is_last = (l == n_layers - 1)
        h = sage_layer(
            a_bin, inv_deg_p, h, w_cat, b_p,
            apply_relu=not is_last,
            compute_dtype=compute_dtype,
            out_dtype=jnp.float32 if is_last else compute_dtype,
            tm=tm, tk=tk,
        )
        # TODO(synk): dropout is identity at inference (eval mode); training-
        # mode stochastic dropout is intentionally not applied.
    return h[:n, :n_classes]


def reference_forward(params, a_norm, x):
    h = x
    n_layers = len(params)
    for l, p in enumerate(params):
        agg = a_norm @ h
        h = h @ p["w_self"] + agg @ p["w_neigh"] + p["b"]
        if l != n_layers - 1:
            h = jnp.maximum(h, 0.0)
    return h


if __name__ == "__main__":
    key = jax.random.PRNGKey(0)

    # Small shapes consistent with the module: N nodes, in_feats -> hidden -> classes.
    N = 64
    in_feats, n_hidden, n_classes, n_layers = 16, 32, 8, 3

    # Deterministic synthetic graph: random directed edges; the row-normalized
    # adjacency (used by the pure-JAX reference) implements the 'mean'
    # aggregator; zero-degree rows stay zero.
    key, k_adj, k_x = jax.random.split(key, 3)
    adj = (jax.random.uniform(k_adj, (N, N)) < 0.1).astype(jnp.float32)
    deg = adj.sum(axis=1, keepdims=True)
    a_norm = adj / jnp.where(deg > 0, deg, 1.0)

    x = jax.random.normal(k_x, (N, in_feats), jnp.float32)
    params = init_params(key, in_feats, n_hidden, n_classes, n_layers)

    ref = reference_forward(params, a_norm, x)

    fwd_f32 = jax.jit(functools.partial(model_forward, compute_dtype=jnp.float32))
    fwd_bf16 = jax.jit(functools.partial(model_forward, compute_dtype=jnp.bfloat16))

    # f32 path: A is still exact (binary bf16 0/1 + f32 1/deg), tight check.
    out = jax.block_until_ready(fwd_f32(params, adj, x))
    assert out.shape == (N, n_classes), out.shape
    assert jnp.allclose(out, ref, atol=1e-4, rtol=1e-4), "mismatch vs reference"

    # bf16 fast path (features/weights bf16, f32 accumulation). Loose check.
    out_bf16 = jax.block_until_ready(fwd_bf16(params, adj, x))
    assert out_bf16.shape == (N, n_classes), out_bf16.shape
    assert bool(jnp.all(jnp.isfinite(out_bf16)))
    assert jnp.allclose(out_bf16, ref, atol=0.15, rtol=0.15), "bf16 path diverged"

    print("KERNEL_OK")
</pallas_src>

<mosaic_0001>
module attributes {stable_mosaic.version = 11 : i64} {
  func.func @_proj_kernel(%arg0: i32, %arg1: memref<64x128xf32, #tpu.memory_space<vmem>>, %arg2: memref<128x256xf32, #tpu.memory_space<vmem>>, %arg3: memref<1x128xf32, #tpu.memory_space<vmem>>, %arg4: memref<64x128xf32, #tpu.memory_space<vmem>>, %arg5: memref<64x128xf32, #tpu.memory_space<vmem>>) attributes {dimension_semantics = [#tpu.dimension_semantics<parallel>], iteration_bounds = array<i64: 2>, scalar_prefetch = 0 : i64, scratch_operands = 0 : i64, tpu.core_type = #tpu.core_type<tc>, window_params = [{transform_indices = @transform_0, window_bounds = array<i64: 64, 128>}, {pipeline_mode = #tpu.pipeline_mode<synchronous>, transform_indices = @transform_1, window_bounds = array<i64: 128, 256>}, {pipeline_mode = #tpu.pipeline_mode<synchronous>, transform_indices = @transform_2, window_bounds = array<i64: 1, 128>}, {transform_indices = @transform_3, window_bounds = array<i64: 64, 128>}, {transform_indices = @transform_4, window_bounds = array<i64: 64, 128>}]} {
    %c0 = arith.constant 0 : index
    %c0_0 = arith.constant 0 : index
    %0 = vector.load %arg1[%c0, %c0_0] : memref<64x128xf32, #tpu.memory_space<vmem>>, vector<64x128xf32>
    %c0_1 = arith.constant 0 : index
    %c0_2 = arith.constant 0 : index
    %1 = vector.load %arg2[%c0_1, %c0_2] : memref<128x256xf32, #tpu.memory_space<vmem>>, vector<128x256xf32>
    %cst = arith.constant dense<0.000000e+00> : vector<64x256xf32>
    %2 = tpu.matmul %0, %1, %cst {dimension_numbers = #tpu.dot_dimension_numbers<[1], [0], [0], [1], [0, 0, 1, 1], [], []>} : vector<64x128xf32>, vector<128x256xf32>, vector<64x256xf32> -> vector<64x256xf32>
    %3 = vector.extract_strided_slice %2 {offsets = [0, 0], sizes = [64, 128], strides = [1, 1]} : vector<64x256xf32> to vector<64x128xf32>
    %c0_3 = arith.constant 0 : index
    %c0_4 = arith.constant 0 : index
    %4 = vector.load %arg3[%c0_3, %c0_4] : memref<1x128xf32, #tpu.memory_space<vmem>>, vector<1x128xf32>
    %5 = vector.broadcast %4 : vector<1x128xf32> to vector<64x128xf32>
    %6 = arith.addf %3, %5 : vector<64x128xf32>
    %c0_5 = arith.constant 0 : index
    %c0_6 = arith.constant 0 : index
    %7 = vector.load %arg4[%c0_5, %c0_6] : memref<64x128xf32, #tpu.memory_space<vmem>>, vector<64x128xf32>
    tpu.vector_store %arg4[%c0_5, %c0_6], %6 {strides = array<i32>} : memref<64x128xf32, #tpu.memory_space<vmem>>, vector<64x128xf32>,
    %8 = vector.extract_strided_slice %2 {offsets = [0, 128], sizes = [64, 128], strides = [1, 1]} : vector<64x256xf32> to vector<64x128xf32>
    %c0_7 = arith.constant 0 : index
    %c0_8 = arith.constant 0 : index
    %9 = vector.load %arg5[%c0_7, %c0_8] : memref<64x128xf32, #tpu.memory_space<vmem>>, vector<64x128xf32>
    tpu.vector_store %arg5[%c0_7, %c0_8], %8 {strides = array<i32>} : memref<64x128xf32, #tpu.memory_space<vmem>>, vector<64x128xf32>,
    return
  }
  func.func @transform_0(%arg0: i32) -> (i32, i32) {
    %c0_i32 = arith.constant 0 : i32
    %c0_i32_0 = arith.constant 0 : i32
    return %arg0, %c0_i32 : i32, i32
  }
  func.func @transform_1(%arg0: i32) -> (i32, i32) {
    %c0_i32 = arith.constant 0 : i32
    %c0_i32_0 = arith.constant 0 : i32
    %c0_i32_1 = arith.constant 0 : i32
    return %c0_i32, %c0_i32_0 : i32, i32
  }
  func.func @transform_2(%arg0: i32) -> (i32, i32) {
    %c0_i32 = arith.constant 0 : i32
    %c0_i32_0 = arith.constant 0 : i32
    %c0_i32_1 = arith.constant 0 : i32
    return %c0_i32, %c0_i32_0 : i32, i32
  }
  func.func @transform_3(%arg0: i32) -> (i32, i32) {
    %c0_i32 = arith.constant 0 : i32
    %c0_i32_0 = arith.constant 0 : i32
    return %arg0, %c0_i32 : i32, i32
  }
  func.func @transform_4(%arg0: i32) -> (i32, i32) {
    %c0_i32 = arith.constant 0 : i32
    %c0_i32_0 = arith.constant 0 : i32
    return %arg0, %c0_i32 : i32, i32
  }
}

module attributes {stable_mosaic.version = 11 : i64} {
  func.func @_agg_kernel(%arg0: i32, %arg1: i32, %arg2: memref<64x128xbf16, #tpu.memory_space<vmem>>, %arg3: memref<128x128xf32, #tpu.memory_space<vmem>>, %arg4: memref<64x128xf32, #tpu.memory_space<vmem>>, %arg5: memref<64x1xf32, #tpu.memory_space<vmem>>, %arg6: memref<64x128xf32, #tpu.memory_space<vmem>>, %arg7: memref<64x128xf32, #tpu.memory_space<vmem>>) attributes {dimension_semantics = [#tpu.dimension_semantics<parallel>, #tpu.dimension_semantics<arbitrary>], iteration_bounds = array<i64: 2, 1>, scalar_prefetch = 0 : i64, scratch_operands = 1 : i64, tpu.core_type = #tpu.core_type<tc>, window_params = [{transform_indices = @transform_0, window_bounds = array<i64: 64, 128>}, {pipeline_mode = #tpu.pipeline_mode<synchronous>, transform_indices = @transform_1, window_bounds = array<i64: 128, 128>}, {transform_indices = @transform_2, window_bounds = array<i64: 64, 128>}, {transform_indices = @transform_3, window_bounds = array<i64: 64, 1>}, {transform_indices = @transform_4, window_bounds = array<i64: 64, 128>}]} {
    %c0_i32 = arith.constant 0 : i32
    %0 = arith.cmpi eq, %arg1, %c0_i32 : i32
    %1 = arith.extui %0 : i1 to i32
    %c0_i32_0 = arith.constant 0 : i32
    %2 = arith.cmpi ne, %1, %c0_i32_0 : i32
    scf.if %2 {
      %cst_9 = arith.constant 0.000000e+00 : f32
      %16 = vector.broadcast %cst_9 : f32 to vector<64x128xf32>
      %c0_10 = arith.constant 0 : index
      %c0_11 = arith.constant 0 : index
      %17 = vector.load %arg7[%c0_10, %c0_11] : memref<64x128xf32, #tpu.memory_space<vmem>>, vector<64x128xf32>
      tpu.vector_store %arg7[%c0_10, %c0_11], %16 {strides = array<i32>} : memref<64x128xf32, #tpu.memory_space<vmem>>, vector<64x128xf32>,
    } else {
    }
    %c128_i32 = arith.constant 128 : i32
    %3 = arith.muli %arg1, %c128_i32 : i32
    %4 = tpu.assume_multiple %3, 128 : i32
    %5 = arith.index_cast %4 : i32 to index
    %c0 = arith.constant 0 : index
    %6 = vector.load %arg3[%5, %c0] : memref<128x128xf32, #tpu.memory_space<vmem>>, vector<128x128xf32>
    %c0_1 = arith.constant 0 : index
    %c0_2 = arith.constant 0 : index
    %7 = vector.load %arg2[%c0_1, %c0_2] : memref<64x128xbf16, #tpu.memory_space<vmem>>, vector<64x128xbf16>
    %8 = arith.extf %7 : vector<64x128xbf16> to vector<64x128xf32>
    %c0_3 = arith.constant 0 : index
    %c0_4 = arith.constant 0 : index
    %9 = vector.load %arg7[%c0_3, %c0_4] : memref<64x128xf32, #tpu.memory_space<vmem>>, vector<64x128xf32>
    %cst = arith.constant dense<0.000000e+00> : vector<64x128xf32>
    %10 = tpu.matmul %8, %6, %cst {dimension_numbers = #tpu.dot_dimension_numbers<[1], [0], [0], [1], [0, 0, 1, 1], [], []>} : vector<64x128xf32>, vector<128x128xf32>, vector<64x128xf32> -> vector<64x128xf32>
    %11 = arith.addf %9, %10 : vector<64x128xf32>
    %c0_5 = arith.constant 0 : index
    %c0_6 = arith.constant 0 : index
    %12 = vector.load %arg7[%c0_5, %c0_6] : memref<64x128xf32, #tpu.memory_space<vmem>>, vector<64x128xf32>
    tpu.vector_store %arg7[%c0_5, %c0_6], %11 {strides = array<i32>} : memref<64x128xf32, #tpu.memory_space<vmem>>, vector<64x128xf32>,
    %c0_i32_7 = arith.constant 0 : i32
    %13 = arith.cmpi eq, %arg1, %c0_i32_7 : i32
    %14 = arith.extui %13 : i1 to i32
    %c0_i32_8 = arith.constant 0 : i32
    %15 = arith.cmpi ne, %14, %c0_i32_8 : i32
    scf.if %15 {
      %c0_9 = arith.constant 0 : index
      %c0_10 = arith.constant 0 : index
      %16 = vector.load %arg5[%c0_9, %c0_10] : memref<64x1xf32, #tpu.memory_space<vmem>>, vector<64x1xf32>
      %c0_11 = arith.constant 0 : index
      %c0_12 = arith.constant 0 : index
      %17 = vector.load %arg7[%c0_11, %c0_12] : memref<64x128xf32, #tpu.memory_space<vmem>>, vector<64x128xf32>
      %18 = vector.broadcast %16 : vector<64x1xf32> to vector<64x128xf32>
      %19 = arith.mulf %18, %17 : vector<64x128xf32>
      %c0_13 = arith.constant 0 : index
      %c0_14 = arith.constant 0 : index
      %20 = vector.load %arg4[%c0_13, %c0_14] : memref<64x128xf32, #tpu.memory_space<vmem>>, vector<64x128xf32>
      %21 = arith.addf %19, %20 : vector<64x128xf32>
      %cst_15 = arith.constant 0.000000e+00 : f32
      %22 = vector.broadcast %cst_15 : f32 to vector<64x128xf32>
      %23 = arith.maximumf %21, %22 : vector<64x128xf32>
      %c0_16 = arith.constant 0 : index
      %c0_17 = arith.constant 0 : index
      %24 = vector.load %arg6[%c0_16, %c0_17] : memref<64x128xf32, #tpu.memory_space<vmem>>, vector<64x128xf32>
      tpu.vector_store %arg6[%c0_16, %c0_17], %23 {strides = array<i32>} : memref<64x128xf32, #tpu.memory_space<vmem>>, vector<64x128xf32>,
    } else {
    }
    return
  }
  func.func @transform_0(%arg0: i32, %arg1: i32) -> (i32, i32) {
    %c0_i32 = arith.constant 0 : i32
    return %arg0, %arg1 : i32, i32
  }
  func.func @transform_1(%arg0: i32, %arg1: i32) -> (i32, i32) {
    %c0_i32 = arith.constant 0 : i32
    %c0_i32_0 = arith.constant 0 : i32
    %c0_i32_1 = arith.constant 0 : i32
    return %c0_i32, %c0_i32_0 : i32, i32
  }
  func.func @transform_2(%arg0: i32, %arg1: i32) -> (i32, i32) {
    %c0_i32 = arith.constant 0 : i32
    %c0_i32_0 = arith.constant 0 : i32
    return %arg0, %c0_i32 : i32, i32
  }
  func.func @transform_3(%arg0: i32, %arg1: i32) -> (i32, i32) {
    %c0_i32 = arith.constant 0 : i32
    %c0_i32_0 = arith.constant 0 : i32
    return %arg0, %c0_i32 : i32, i32
  }
  func.func @transform_4(%arg0: i32, %arg1: i32) -> (i32, i32) {
    %c0_i32 = arith.constant 0 : i32
    %c0_i32_0 = arith.constant 0 : i32
    return %arg0, %c0_i32 : i32, i32
  }
}

module attributes {stable_mosaic.version = 11 : i64} {
  func.func @_agg_kernel(%arg0: i32, %arg1: i32, %arg2: memref<64x128xbf16, #tpu.memory_space<vmem>>, %arg3: memref<128x128xf32, #tpu.memory_space<vmem>>, %arg4: memref<64x128xf32, #tpu.memory_space<vmem>>, %arg5: memref<64x1xf32, #tpu.memory_space<vmem>>, %arg6: memref<64x128xf32, #tpu.memory_space<vmem>>, %arg7: memref<64x128xf32, #tpu.memory_space<vmem>>) attributes {dimension_semantics = [#tpu.dimension_semantics<parallel>, #tpu.dimension_semantics<arbitrary>], iteration_bounds = array<i64: 2, 1>, scalar_prefetch = 0 : i64, scratch_operands = 1 : i64, tpu.core_type = #tpu.core_type<tc>, window_params = [{transform_indices = @transform_0, window_bounds = array<i64: 64, 128>}, {pipeline_mode = #tpu.pipeline_mode<synchronous>, transform_indices = @transform_1, window_bounds = array<i64: 128, 128>}, {transform_indices = @transform_2, window_bounds = array<i64: 64, 128>}, {transform_indices = @transform_3, window_bounds = array<i64: 64, 1>}, {transform_indices = @transform_4, window_bounds = array<i64: 64, 128>}]} {
    %c0_i32 = arith.constant 0 : i32
    %0 = arith.cmpi eq, %arg1, %c0_i32 : i32
    %1 = arith.extui %0 : i1 to i32
    %c0_i32_0 = arith.constant 0 : i32
    %2 = arith.cmpi ne, %1, %c0_i32_0 : i32
    scf.if %2 {
      %cst_9 = arith.constant 0.000000e+00 : f32
      %16 = vector.broadcast %cst_9 : f32 to vector<64x128xf32>
      %c0_10 = arith.constant 0 : index
      %c0_11 = arith.constant 0 : index
      %17 = vector.load %arg7[%c0_10, %c0_11] : memref<64x128xf32, #tpu.memory_space<vmem>>, vector<64x128xf32>
      tpu.vector_store %arg7[%c0_10, %c0_11], %16 {strides = array<i32>} : memref<64x128xf32, #tpu.memory_space<vmem>>, vector<64x128xf32>,
    } else {
    }
    %c128_i32 = arith.constant 128 : i32
    %3 = arith.muli %arg1, %c128_i32 : i32
    %4 = tpu.assume_multiple %3, 128 : i32
    %5 = arith.index_cast %4 : i32 to index
    %c0 = arith.constant 0 : index
    %6 = vector.load %arg3[%5, %c0] : memref<128x128xf32, #tpu.memory_space<vmem>>, vector<128x128xf32>
    %c0_1 = arith.constant 0 : index
    %c0_2 = arith.constant 0 : index
    %7 = vector.load %arg2[%c0_1, %c0_2] : memref<64x128xbf16, #tpu.memory_space<vmem>>, vector<64x128xbf16>
    %8 = arith.extf %7 : vector<64x128xbf16> to vector<64x128xf32>
    %c0_3 = arith.constant 0 : index
    %c0_4 = arith.constant 0 : index
    %9 = vector.load %arg7[%c0_3, %c0_4] : memref<64x128xf32, #tpu.memory_space<vmem>>, vector<64x128xf32>
    %cst = arith.constant dense<0.000000e+00> : vector<64x128xf32>
    %10 = tpu.matmul %8, %6, %cst {dimension_numbers = #tpu.dot_dimension_numbers<[1], [0], [0], [1], [0, 0, 1, 1], [], []>} : vector<64x128xf32>, vector<128x128xf32>, vector<64x128xf32> -> vector<64x128xf32>
    %11 = arith.addf %9, %10 : vector<64x128xf32>
    %c0_5 = arith.constant 0 : index
    %c0_6 = arith.constant 0 : index
    %12 = vector.load %arg7[%c0_5, %c0_6] : memref<64x128xf32, #tpu.memory_space<vmem>>, vector<64x128xf32>
    tpu.vector_store %arg7[%c0_5, %c0_6], %11 {strides = array<i32>} : memref<64x128xf32, #tpu.memory_space<vmem>>, vector<64x128xf32>,
    %c0_i32_7 = arith.constant 0 : i32
    %13 = arith.cmpi eq, %arg1, %c0_i32_7 : i32
    %14 = arith.extui %13 : i1 to i32
    %c0_i32_8 = arith.constant 0 : i32
    %15 = arith.cmpi ne, %14, %c0_i32_8 : i32
    scf.if %15 {
      %c0_9 = arith.constant 0 : index
      %c0_10 = arith.constant 0 : index
      %16 = vector.load %arg5[%c0_9, %c0_10] : memref<64x1xf32, #tpu.memory_space<vmem>>, vector<64x1xf32>
      %c0_11 = arith.constant 0 : index
      %c0_12 = arith.constant 0 : index
      %17 = vector.load %arg7[%c0_11, %c0_12] : memref<64x128xf32, #tpu.memory_space<vmem>>, vector<64x128xf32>
      %18 = vector.broadcast %16 : vector<64x1xf32> to vector<64x128xf32>
      %19 = arith.mulf %18, %17 : vector<64x128xf32>
      %c0_13 = arith.constant 0 : index
      %c0_14 = arith.constant 0 : index
      %20 = vector.load %arg4[%c0_13, %c0_14] : memref<64x128xf32, #tpu.memory_space<vmem>>, vector<64x128xf32>
      %21 = arith.addf %19, %20 : vector<64x128xf32>
      %c0_15 = arith.constant 0 : index
      %c0_16 = arith.constant 0 : index
      %22 = vector.load %arg6[%c0_15, %c0_16] : memref<64x128xf32, #tpu.memory_space<vmem>>, vector<64x128xf32>
      tpu.vector_store %arg6[%c0_15, %c0_16], %21 {strides = array<i32>} : memref<64x128xf32, #tpu.memory_space<vmem>>, vector<64x128xf32>,
    } else {
    }
    return
  }
  func.func @transform_0(%arg0: i32, %arg1: i32) -> (i32, i32) {
    %c0_i32 = arith.constant 0 : i32
    return %arg0, %arg1 : i32, i32
  }
  func.func @transform_1(%arg0: i32, %arg1: i32) -> (i32, i32) {
    %c0_i32 = arith.constant 0 : i32
    %c0_i32_0 = arith.constant 0 : i32
    %c0_i32_1 = arith.constant 0 : i32
    return %c0_i32, %c0_i32_0 : i32, i32
  }
  func.func @transform_2(%arg0: i32, %arg1: i32) -> (i32, i32) {
    %c0_i32 = arith.constant 0 : i32
    %c0_i32_0 = arith.constant 0 : i32
    return %arg0, %c0_i32 : i32, i32
  }
  func.func @transform_3(%arg0: i32, %arg1: i32) -> (i32, i32) {
    %c0_i32 = arith.constant 0 : i32
    %c0_i32_0 = arith.constant 0 : i32
    return %arg0, %c0_i32 : i32, i32
  }
  func.func @transform_4(%arg0: i32, %arg1: i32) -> (i32, i32) {
    %c0_i32 = arith.constant 0 : i32
    %c0_i32_0 = arith.constant 0 : i32
    return %arg0, %c0_i32 : i32, i32
  }
}

</mosaic_0001>

<bundles_post_ra>
// kernel: model_forward.6
= control target key start
LH: loop header
LB: loop body
LE: loop exit
PB: predicated region body
PF: predicated region fallthrough
CT: control target
= control target key end

     0   :  { %s594_s15 = smov 0   ;;  %s748_s0 = inlined_call_operand.vmem [shape: f32[128,128], index: 0, kind: input, shape index: {}]   ;;  %s749_s1 = inlined_call_operand.vmem [shape: f32[128,256], index: 1, kind: input, shape index: {}]   ;;  %s750_s2 = inlined_call_operand.vmem [shape: f32[1,128], index: 2, kind: input, shape index: {}]   ;;  %s751_s3 = inlined_call_operand.vmem [shape: f32[128,128], index: 3, kind: output, shape index: {0}]   ;;  %s752_s4 = inlined_call_operand.vmem [shape: f32[128,128], index: 4, kind: output, shape index: {1}]  }
   0x1 LB: > { %s489_s16 = sadd.s32 4294967295, %s566_s15   ;;  %p493_p0 = scmp.ge.s32.totalorder %s566_s15, 1  ;;  %s566_s15 = sphi %s594_s15, %s15_s15  }
   0x2   : > { %p166_p1 = scmp.lt.s32.totalorder %s566_s15, 3 }
   0x4   : > { %p167_p2 = pnand %p493_p0, %p166_p1 }
   0x5   : > { %v224_v0 = vld [vmem:[%s749_s1 + $0x8] sm:$0xff] (!%p167_p2)  ;;  %v226_v1 = vld [vmem:[%s749_s1 + $0x18] sm:$0xff] (!%p167_p2)  ;;  %v223_v2 = vld [vmem:[%s749_s1] sm:$0xff] (!%p167_p2)  ;;  %v568_v7 = vmov (!%p167_p2), 0.0   ;;  %s494_s11 = sshll.u32 (!%p167_p2), %s489_s16, 3 }
   0x6   : > { %170 = sbr.rel (%p167_p2) target bundleno = 267 (0x10b), region = 32  ;;  %v503_v3 = vpack.c.bf16 (!%p167_p2), %v226_v1, %v224_v0  ;;  %v225_v4 = vld [vmem:[%s749_s1 + $0x10] sm:$0xff] (!%p167_p2)  ;;  %v228_v5 = vld [vmem:[%s749_s1 + $0x28] sm:$0xff] (!%p167_p2)  ;;  %v230_v6 = vld [vmem:[%s749_s1 + $0x38] sm:$0xff] (!%p167_p2)  ;;  %319 = vmatprep.mubr.f32.mxu0 (!%p167_p2), %v568_v7  ;;  %343 = vmatprep.mubr.f32.mxu1 (!%p167_p2), %v568_v7  ;;  %p198_p3 = scmp.lt.s32.totalorder (!%p167_p2), %s494_s11, 15 }
   0x7   : > { %v505_v8 = vpack.c.bf16 (!%p167_p2), %v225_v4, %v223_v2  ;;  %v507_v9 = vpack.c.bf16 (!%p167_p2), %v230_v6, %v228_v5  ;;  %v227_v10 = vld [vmem:[%s749_s1 + $0x20] sm:$0xff] (!%p167_p2)  ;;  %v229_v11 = vld [vmem:[%s749_s1 + $0x30] sm:$0xff] (!%p167_p2)  ;;  %v232_v12 = vld [vmem:[%s749_s1 + $0x48] sm:$0xff] (!%p167_p2) }
   0x8   : > { %504 = vmatprep.subr.bf16.mxu0 (!%p167_p2), %v503_v3  ;;  %535 = vmatprep.subr.bf16.mxu1 (!%p167_p2), %v503_v3  ;;  %v234_v13 = vld [vmem:[%s749_s1 + $0x58] sm:$0xff] (!%p167_p2)  ;;  %v509_v14 = vpack.c.bf16 (!%p167_p2), %v229_v11, %v227_v10  ;;  %v231_v16 = vld [vmem:[%s749_s1 + $0x40] sm:$0xff] (!%p167_p2)  ;;  %v233_v17 = vld [vmem:[%s749_s1 + $0x50] sm:$0xff] (!%p167_p2) }
   0x9   : > { %506 = vmatpush1.bf16.msra.mxu0 (!%p167_p2), %v505_v8  ;;  %543 = vmatpush1.bf16.msra.mxu1 (!%p167_p2), %v505_v8  ;;  %v511_v15 = vpack.c.bf16 (!%p167_p2), %v234_v13, %v232_v12  ;;  %v236_v18 = vld [vmem:[%s749_s1 + $0x68] sm:$0xff] (!%p167_p2)  ;;  %v238_v19 = vld [vmem:[%s749_s1 + $0x78] sm:$0xff] (!%p167_p2)  ;;  %v513_v20 = vpack.c.bf16 (!%p167_p2), %v233_v17, %v231_v16  ;;  %v235_v22 = vld [vmem:[%s749_s1 + $0x60] sm:$0xff] (!%p167_p2) }
   0xa   : > { %508 = vmatprep.subr.bf16.mxu0 (!%p167_p2), %v507_v9  ;;  %536 = vmatprep.subr.bf16.mxu1 (!%p167_p2), %v507_v9  ;;  %v515_v21 = vpack.c.bf16 (!%p167_p2), %v238_v19, %v236_v18  ;;  %v237_v23 = vld [vmem:[%s749_s1 + $0x70] sm:$0xff] (!%p167_p2)  ;;  %v240_v24 = vld [vmem:[%s749_s1 + $0x88] sm:$0xff] (!%p167_p2)  ;;  %v242_v25 = vld [vmem:[%s749_s1 + $0x98] sm:$0xff] (!%p167_p2) }
   0xb   : > { %v517_v26 = vpack.c.bf16 (!%p167_p2), %v237_v23, %v235_v22  ;;  %v519_v27 = vpack.c.bf16 (!%p167_p2), %v242_v25, %v240_v24  ;;  %v239_v28 = vld [vmem:[%s749_s1 + $0x80] sm:$0xff] (!%p167_p2)  ;;  %v241_v29 = vld [vmem:[%s749_s1 + $0x90] sm:$0xff] (!%p167_p2)  ;;  %v244_v30 = vld [vmem:[%s749_s1 + $0xa8] sm:$0xff] (!%p167_p2) }
   0xc   : > { %v246_v31 = vld [vmem:[%s749_s1 + $0xb8] sm:$0xff] (!%p167_p2)  ;;  %v521_v32 = vpack.c.bf16 (!%p167_p2), %v241_v29, %v239_v28  ;;  %v243_v34 = vld [vmem:[%s749_s1 + $0xa0] sm:$0xff] (!%p167_p2)  ;;  %v245_v35 = vld [vmem:[%s749_s1 + $0xb0] sm:$0xff] (!%p167_p2) }
   0xd   : > { %510 = vmatpush1.bf16.msra.mxu0 %v509_v14  ;;  %544 = vmatpush1.bf16.msra.mxu1 %v509_v14  ;;  %v523_v33 = vpack.c.bf16 %v246_v31, %v244_v30  ;;  %v248_v36 = vld [vmem:[%s749_s1 + $0xc8] sm:$0xff]  ;;  %v250_v37 = vld [vmem:[%s749_s1 + $0xd8] sm:$0xff]  ;;  %v525_v38 = vpack.c.bf16 %v245_v35, %v243_v34  ;;  %v247_v40 = vld [vmem:[%s749_s1 + $0xc0] sm:$0xff]  ;;  %s754_s11 = smov (!%p198_p3, %s494_s11), 15 }
   0xe   : > { %512 = vmatprep.subr.bf16.mxu0 %v511_v15  ;;  %537 = vmatprep.subr.bf16.mxu1 %v511_v15  ;;  %v527_v39 = vpack.c.bf16 %v250_v37, %v248_v36  ;;  %v249_v41 = vld [vmem:[%s749_s1 + $0xd0] sm:$0xff]  ;;  %v252_v42 = vld [vmem:[%s749_s1 + $0xe8] sm:$0xff]  ;;  %v254_v43 = vld [vmem:[%s749_s1 + $0xf8] sm:$0xff]  ;;  %s702_s7 = sshll.u32 %s754_s11, 3 }
   0xf   : > { %v529_v44 = vpack.c.bf16 %v249_v41, %v247_v40  ;;  %v531_v45 = vpack.c.bf16 %v254_v43, %v252_v42  ;;  %v251_v46 = vld [vmem:[%s749_s1 + $0xe0] sm:$0xff]  ;;  %v253_v47 = vld [vmem:[%s749_s1 + $0xf0] sm:$0xff]  ;;  %s201_s10 = scalar_lea.vmem %s748_s0, %s702_s7  ;;  %s721_s17 = scalar_lea.vmem %s752_s4, %s702_s7 }
  0x10   : > { %v533_v48 = vpack.c.bf16 %v253_v47, %v251_v46  ;;  %v215_v49 = vld [vmem:[%s201_s10] sm:$0xff]  ;;  %v216_v51 = vld [vmem:[%s201_s10 + $0x8] sm:$0xff]  ;;  %v217_v53 = vld [vmem:[%s201_s10 + $0x10] sm:$0xff]  ;;  %s727_s20 = scalar_lea.vmem %s751_s3, %s702_s7 }
  0x11   : > { %514 = vmatpush1.bf16.msra.mxu0 %v513_v20  ;;  %545 = vmatpush1.bf16.msra.mxu1 %v513_v20  ;;  %v219_v50 = vld [vmem:[%s201_s10 + $0x20] sm:$0xff]  ;;  %v220_v52 = vld [vmem:[%s201_s10 + $0x28] sm:$0xff]  ;;  %v221_v54 = vld [vmem:[%s201_s10 + $0x30] sm:$0xff] }
  0x12   : > { %516 = vmatprep.subr.bf16.mxu0 %v515_v21  ;;  %538 = vmatprep.subr.bf16.mxu1 %v515_v21  ;;  %v218_v55 = vld [vmem:[%s201_s10 + $0x18] sm:$0xff]  ;;  %v500_v57 = vld [vmem:[%s750_s2] ss:$0 sm:$0xff] }
  0x13   : > { %v222_v56 = vld [vmem:[%s201_s10 + $0x38] sm:$0xff] }
  0x15   : > { %518 = vmatpush1.bf16.msra.mxu0 %v517_v26  ;;  %546 = vmatpush1.bf16.msra.mxu1 %v517_v26 }
  0x16   : > { %520 = vmatprep.subr.bf16.mxu0 %v519_v27  ;;  %539 = vmatprep.subr.bf16.mxu1 %v519_v27 }
  0x19   : > { %522 = vmatpush1.bf16.msra.mxu0 %v521_v32  ;;  %547 = vmatpush1.bf16.msra.mxu1 %v521_v32 }
  0x1a   : > { %524 = vmatprep.subr.bf16.mxu0 %v523_v33  ;;  %540 = vmatprep.subr.bf16.mxu1 %v523_v33 }
  0x1d   : > { %526 = vmatpush1.bf16.msra.mxu0 %v525_v38  ;;  %548 = vmatpush1.bf16.msra.mxu1 %v525_v38 }
  0x1e   : > { %528 = vmatprep.subr.bf16.mxu0 %v527_v39  ;;  %541 = vmatprep.subr.bf16.mxu1 %v527_v39 }
  0x21   : > { %530 = vmatpush1.bf16.msra.mxu0 %v529_v44  ;;  %549 = vmatpush1.bf16.msra.mxu1 %v529_v44 }
  0x22   : > { %532 = vmatprep.subr.bf16.mxu0 %v531_v45  ;;  %542 = vmatprep.subr.bf16.mxu1 %v531_v45 }
  0x25   : > { %534 = vmatpush1.bf16.msra.mxu0 %v533_v48  ;;  %550 = vmatpush1.bf16.msra.mxu1 %v533_v48 }
  0x28   : > { %320 = vmatmul.mubr.f32.vlgmr.msra.gmra.mrb[0].mxu0 %v215_v49  ;;  %344 = vmatmul.mubr.f32.vlgmr.msra.gmra.mrb[0].mxu1 %v219_v50 }
  0x29   : > { %325 = vmatprep.mubr.f32.mxu0 %v568_v7  ;;  %349 = vmatprep.mubr.f32.mxu1 %v568_v7 }
  0x2c   : > { %326 = vmatmul.mubr.f32.gmra.mrb[2].mxu0 %v216_v51  ;;  %350 = vmatmul.mubr.f32.gmra.mrb[2].mxu1 %v220_v52 }
  0x2d   : > { %331 = vmatprep.mubr.f32.mxu0 %v568_v7  ;;  %355 = vmatprep.mubr.f32.mxu1 %v568_v7 }
  0x30   : > { %332 = vmatmul.mubr.f32.gmra.mrb[4].mxu0 %v217_v53  ;;  %356 = vmatmul.mubr.f32.gmra.mrb[4].mxu1 %v221_v54 }
  0x31   : > { %337 = vmatprep.mubr.f32.mxu0 %v568_v7  ;;  %361 = vmatprep.mubr.f32.mxu1 %v568_v7 }
  0x34   : > { %338 = vmatmul.mubr.f32.gmra.mrb[6].mxu0 %v218_v55  ;;  %362 = vmatmul.mubr.f32.gmra.mrb[6].mxu1 %v222_v56 }
  0xfb   : > { %v321_v58 = vpop.f32.mrb[0].mxu0  ;;  %v345_v59 = vpop.f32.mrb[0].mxu1 }
  0xfc   : > { %v375_v60 = vadd.f32 %v500_v57, %v321_v58  ;;  %v379_v61 = vadd.f32 %v500_v57, %v345_v59  ;;  %v323_v62 = vpop.f32.mrb[1].mxu0  ;;  %v347_v63 = vpop.f32.mrb[1].mxu1 }
  0xfd   : > { %391 = vst [vmem:[%s721_s17] sm:$0xff] %v323_v62  ;;  %395 = vst [vmem:[%s721_s17 + $0x20] sm:$0xff] %v347_v63 }
  0xfe   : > { %383 = vst [vmem:[%s727_s20] sm:$0xff] %v375_v60  ;;  %387 = vst [vmem:[%s727_s20 + $0x20] sm:$0xff] %v379_v61 }
  0xff   : > { %v327_v0 = vpop.f32.mrb[2].mxu0  ;;  %v351_v1 = vpop.f32.mrb[2].mxu1 }
 0x100   : > { %v376_v2 = vadd.f32 %v500_v57, %v327_v0  ;;  %v380_v3 = vadd.f32 %v500_v57, %v351_v1  ;;  %v329_v4 = vpop.f32.mrb[3].mxu0  ;;  %v353_v5 = vpop.f32.mrb[3].mxu1 }
 0x101   : > { %392 = vst [vmem:[%s721_s17 + $0x8] sm:$0xff] %v329_v4  ;;  %396 = vst [vmem:[%s721_s17 + $0x28] sm:$0xff] %v353_v5 }
 0x102   : > { %384 = vst [vmem:[%s727_s20 + $0x8] sm:$0xff] %v376_v2  ;;  %388 = vst [vmem:[%s727_s20 + $0x28] sm:$0xff] %v380_v3 }
 0x103   : > { %v333_v6 = vpop.f32.mrb[4].mxu0  ;;  %v357_v7 = vpop.f32.mrb[4].mxu1 }
 0x104   : > { %v377_v8 = vadd.f32 %v500_v57, %v333_v6  ;;  %v381_v9 = vadd.f32 %v500_v57, %v357_v7  ;;  %v335_v10 = vpop.f32.mrb[5].mxu0  ;;  %v359_v11 = vpop.f32.mrb[5].mxu1 }
 0x105   : > { %393 = vst [vmem:[%s721_s17 + $0x10] sm:$0xff] %v335_v10  ;;  %397 = vst [vmem:[%s721_s17 + $0x30] sm:$0xff] %v359_v11 }
 0x106   : > { %385 = vst [vmem:[%s727_s20 + $0x10] sm:$0xff] %v377_v8  ;;  %389 = vst [vmem:[%s727_s20 + $0x30] sm:$0xff] %v381_v9 }
 0x107   : > { %v339_v12 = vpop.f32.mrb[6].mxu0  ;;  %v363_v13 = vpop.f32.mrb[6].mxu1 }
 0x108   : > { %v378_v14 = vadd.f32 %v500_v57, %v339_v12  ;;  %v382_v15 = vadd.f32 %v500_v57, %v363_v13  ;;  %v341_v16 = vpop.f32.mrb[7].mxu0  ;;  %v365_v17 = vpop.f32.mrb[7].mxu1 }
 0x109   : > { %394 = vst [vmem:[%s721_s17 + $0x18] sm:$0xff] %v341_v16  ;;  %398 = vst [vmem:[%s721_s17 + $0x38] sm:$0xff] %v365_v17 }
 0x10a   : > { %386 = vst [vmem:[%s727_s20 + $0x18] sm:$0xff] %v378_v14  ;;  %390 = vst [vmem:[%s727_s20 + $0x38] sm:$0xff] %v382_v15 }
 0x10b PF: > { %s15_s15 = sadd.s32 1, %s566_s15  }
 0x10c   : > { %p12_p4 = scmp.ge.s32.totalorder %s15_s15, 4  }
 0x10e   :  { %14 = sbr.rel (!%p12_p4) target bundleno = 1 (0x1), region = 74 }

// kernel: model_forward.7
= control target key start
LH: loop header
LB: loop body
LE: loop exit
PB: predicated region body
PF: predicated region fallthrough
CT: control target
= control target key end

     0   :  { %s863_s15 = smov 0   ;;  %s865_s16 = smov 0   ;;  %s999_s0 = inlined_call_operand.vmem [shape: bf16[128,128], index: 0, kind: input, shape index: {}]   ;;  %s1000_s1 = inlined_call_operand.vmem [shape: f32[128,128], index: 1, kind: input, shape index: {}]   ;;  %s1001_s2 = inlined_call_operand.vmem [shape: f32[128,128], index: 2, kind: input, shape index: {}]   ;;  %s1002_s3 = inlined_call_operand.vmem [shape: f32[128,1], index: 3, kind: input, shape index: {}]   ;;  %s1003_s4 = inlined_call_operand.vmem [shape: f32[128,128], index: 4, kind: output, shape index: {}]  }
   0x1   :  { %s867_s17 = smov 0  }
   0x2 LB: > { %s26_s18 = sadd.s32 1, %s831_s16  ;;  %p640_p0 = scmp.ge.s32.totalorder %s835_s17, 1  ;;  %s835_s17 = sphi %s867_s17, %s14_s17   ;;  %s831_s16 = sphi %s865_s16, %s1005_s16   ;;  %s827_s15 = sphi %s863_s15, %s1004_s15  }
   0x3   : > { %p28_p1 = scmp.ge.s32.totalorder %s26_s18, 2  ;;  %p202_p2 = scmp.lt.s32.totalorder %s835_s17, 3 }
   0x5   : > { %s1007_s18 = smov (%p28_p1, %s26_s18), 0  ;;  %p203_p3 = pnand %p640_p0, %p202_p2 }
   0x6   : > { %v282_v0 = vld [vmem:[%s1000_s1] sm:$0xff] (!%p203_p3)  ;;  %v283_v1 = vld [vmem:[%s1000_s1 + $0x8] sm:$0xff] (!%p203_p3)  ;;  %v284_v2 = vld [vmem:[%s1000_s1 + $0x10] sm:$0xff] (!%p203_p3)  ;;  %s641_s25 = sshll.u32 (!%p203_p3), %s827_s15, 3  ;;  %v837_v5 = vmov (!%p203_p3), 0  }
   0x7   : > { %206 = sbr.rel (%p203_p3) target bundleno = 265 (0x109), region = 36  ;;  %v738_v3 = vpack.c.bf16 (!%p203_p3), %v283_v1, %v282_v0  ;;  %v285_v4 = vld [vmem:[%s1000_s1 + $0x18] sm:$0xff] (!%p203_p3)  ;;  %p242_p4 = scmp.lt.s32.totalorder (!%p203_p3), %s641_s25, 15  ;;  %812 = vset.pattern.permute.xlu1 (!%p203_p3), %v837_v5  ;;  %811 = vset.pattern.permute.xlu0 (!%p203_p3), %v837_v5  ;;  %v286_v7 = vld [vmem:[%s1000_s1 + $0x20] sm:$0xff] (!%p203_p3)  ;;  %v287_v8 = vld [vmem:[%s1000_s1 + $0x28] sm:$0xff] (!%p203_p3) }
   0x8   : > { %v742_v6 = vpack.c.bf16 (!%p203_p3), %v285_v4, %v284_v2  ;;  %v746_v9 = vpack.c.bf16 (!%p203_p3), %v287_v8, %v286_v7  ;;  %v288_v10 = vld [vmem:[%s1000_s1 + $0x30] sm:$0xff] (!%p203_p3)  ;;  %v289_v11 = vld [vmem:[%s1000_s1 + $0x38] sm:$0xff] (!%p203_p3)  ;;  %v290_v19 = vld [vmem:[%s1000_s1 + $0x40] sm:$0xff] (!%p203_p3) }
   0x9   : > { %739 = vmatprep.subr.bf16.mxu0 (!%p203_p3), %v738_v3  ;;  %770 = vmatprep.subr.bf16.mxu1 (!%p203_p3), %v738_v3  ;;  %v750_v18 = vpack.c.bf16 (!%p203_p3), %v289_v11, %v288_v10  ;;  %v291_v20 = vld [vmem:[%s1000_s1 + $0x48] sm:$0xff] (!%p203_p3)  ;;  %v292_v24 = vld [vmem:[%s1000_s1 + $0x50] sm:$0xff] (!%p203_p3)  ;;  %v293_v25 = vld [vmem:[%s1000_s1 + $0x58] sm:$0xff] (!%p203_p3) }
   0xa   : > { %741 = vmatpush3.bf16.msra.mxu0 (!%p203_p3), %v738_v3  ;;  %778 = vmatpush3.bf16.msra.mxu1 (!%p203_p3), %v738_v3  ;;  %v754_v23 = vpack.c.bf16 (!%p203_p3), %v291_v20, %v290_v19  ;;  %v758_v28 = vpack.c.bf16 (!%p203_p3), %v293_v25, %v292_v24  ;;  %v294_v29 = vld [vmem:[%s1000_s1 + $0x60] sm:$0xff] (!%p203_p3)  ;;  %v295_v30 = vld [vmem:[%s1000_s1 + $0x68] sm:$0xff] (!%p203_p3)  ;;  %v296_v34 = vld [vmem:[%s1000_s1 + $0x70] sm:$0xff] (!%p203_p3) }
   0xb   : > { %743 = vmatprep.subr.bf16.mxu0 (!%p203_p3), %v742_v6  ;;  %771 = vmatprep.subr.bf16.mxu1 (!%p203_p3), %v742_v6  ;;  %v762_v33 = vpack.c.bf16 (!%p203_p3), %v295_v30, %v294_v29  ;;  %v297_v35 = vld [vmem:[%s1000_s1 + $0x78] sm:$0xff] (!%p203_p3) }
   0xc   : > { %v766_v36 = vpack.c.bf16 (!%p203_p3), %v297_v35, %v296_v34 }
   0xe   : > { %s1009_s25 = smov (!%p242_p4, %s641_s25), 15  ;;  %745 = vmatpush3.bf16.msra.mxu0 %v742_v6  ;;  %779 = vmatpush3.bf16.msra.mxu1 %v742_v6 }
   0xf   : > { %s642_s6 = sshll.u32 %s1009_s25, 2  ;;  %s899_s7 = sshll.u32 %s1009_s25, 3  ;;  %747 = vmatprep.subr.bf16.mxu0 %v746_v9  ;;  %772 = vmatprep.subr.bf16.mxu1 %v746_v9 }
  0x10   : > { %s910_s14 = scalar_lea.vmem %s999_s0, %s642_s6  ;;  %s916_s20 = scalar_lea.vmem %s1002_s3, %s899_s7 }
  0x11   : > { %v919_v12 = vld [vmem:[%s910_s14] sm:$0xff]   ;;  %v922_v13 = vld [vmem:[%s910_s14 + $0x10] sm:$0xff]   ;;  %v449_v21 = vld [vmem:[%s916_s20 + $0x18] sm:$0xff] }
  0x12   : > { %v653_v14 = vunpack.c.l.bf16 %v919_v12  ;;  %v661_v15 = vunpack.c.l.bf16 %v922_v13  ;;  %v448_v16 = vld [vmem:[%s916_s20 + $0x10] sm:$0xff]  ;;  %v446_v17 = vld [vmem:[%s916_s20] sm:$0xff]  ;;  %749 = vmatpush3.bf16.msra.mxu0 %v746_v9  ;;  %780 = vmatpush3.bf16.msra.mxu1 %v746_v9  ;;  %v447_v22 = vld [vmem:[%s916_s20 + $0x8] sm:$0xff]  ;;  %v654_v39 = vunpack.c.h.bf16 %v919_v12  ;;  %v662_v40 = vunpack.c.h.bf16 %v922_v13 }
  0x13   : > { %474 = vperm.xlu1 %812, %v448_v16   ;;  %464 = vperm.xlu0 %811, %v446_v17   ;;  %v451_v26 = vld [vmem:[%s916_s20 + $0x28] sm:$0xff]  ;;  %v450_v27 = vld [vmem:[%s916_s20 + $0x20] sm:$0xff]  ;;  %v453_v31 = vld [vmem:[%s916_s20 + $0x38] sm:$0xff] }
  0x14   : > { %726 = vmatprep.mubr.f32.mxu0 %v653_v14  ;;  %732 = vmatprep.mubr.f32.mxu1 %v661_v15  ;;  %v452_v32 = vld [vmem:[%s916_s20 + $0x30] sm:$0xff]  ;;  %v667_v37 = vld [vmem:[%s910_s14 + $0x8] sm:$0xff]   ;;  %v669_v38 = vld [vmem:[%s910_s14 + $0x18] sm:$0xff]   ;;  %s966_s14 = scalar_lea.vmem %s1001_s2, %s899_s7  ;;  %s976_s20 = scalar_lea.vmem %s1003_s4, %s899_s7 }
  0x15   : > { %751 = vmatprep.subr.bf16.mxu0 %v750_v18  ;;  %773 = vmatprep.subr.bf16.mxu1 %v750_v18  ;;  %v657_v41 = vunpack.c.l.bf16 %v667_v37  ;;  %v665_v42 = vunpack.c.l.bf16 %v669_v38  ;;  %v658_v43 = vunpack.c.h.bf16 %v667_v37  ;;  %v666_v44 = vunpack.c.h.bf16 %v669_v38  ;;  %v511_v52 = vld [vmem:[%s966_s14 + $0x8] sm:$0xff]  ;;  %v510_v58 = vld [vmem:[%s966_s14] sm:$0xff]  ;;  %v513_v6 = vld [vmem:[%s966_s14 + $0x18] sm:$0xff] }
  0x16   : > { %753 = vmatpush3.bf16.msra.mxu0 %v750_v18  ;;  %781 = vmatpush3.bf16.msra.mxu1 %v750_v18  ;;  %v515_v54 = vld [vmem:[%s966_s14 + $0x28] sm:$0xff]  ;;  %v514_v60 = vld [vmem:[%s966_s14 + $0x20] sm:$0xff]  ;;  %v517_v8 = vld [vmem:[%s966_s14 + $0x38] sm:$0xff] }
  0x17   : > { %479 = vperm.xlu1 %812, %v449_v21   ;;  %469 = vperm.xlu0 %811, %v447_v22   ;;  %v512_v14 = vld [vmem:[%s966_s14 + $0x10] sm:$0xff] }
  0x18   : > { %755 = vmatprep.subr.bf16.mxu0 %v754_v23  ;;  %774 = vmatprep.subr.bf16.mxu1 %v754_v23  ;;  %v516_v16 = vld [vmem:[%s966_s14 + $0x30] sm:$0xff] }
  0x1a   : > { %757 = vmatpush3.bf16.msra.mxu0 %v754_v23  ;;  %782 = vmatpush3.bf16.msra.mxu1 %v754_v23 }
  0x1b   : > { %489 = vperm.xlu1 %812, %v451_v26   ;;  %484 = vperm.xlu0 %811, %v450_v27  }
  0x1c   : > { %759 = vmatprep.subr.bf16.mxu0 %v758_v28  ;;  %775 = vmatprep.subr.bf16.mxu1 %v758_v28 }
  0x1e   : > { %761 = vmatpush3.bf16.msra.mxu0 %v758_v28  ;;  %783 = vmatpush3.bf16.msra.mxu1 %v758_v28 }
  0x1f   : > { %499 = vperm.xlu1 %812, %v453_v31   ;;  %494 = vperm.xlu0 %811, %v452_v32  }
  0x20   : > { %763 = vmatprep.subr.bf16.mxu0 %v762_v33  ;;  %776 = vmatprep.subr.bf16.mxu1 %v762_v33 }
  0x22   : > { %765 = vmatpush3.bf16.msra.mxu0 %v762_v33  ;;  %784 = vmatpush3.bf16.msra.mxu1 %v762_v33 }
  0x23   : > { %767 = vmatprep.subr.bf16.mxu0 %v766_v36  ;;  %777 = vmatprep.subr.bf16.mxu1 %v766_v36 }
  0x26   : > { %769 = vmatpush3.bf16.msra.mxu0 %v766_v36  ;;  %785 = vmatpush3.bf16.msra.mxu1 %v766_v36 }
  0x29   : > { %727 = vmatmul.mubr.f32.vlgmr.msra.gmra.mrb[0].mxu0 %v654_v39  ;;  %733 = vmatmul.mubr.f32.vlgmr.msra.gmra.mrb[0].mxu1 %v662_v40 }
  0x2a   : > { %729 = vmatprep.mubr.f32.mxu0 %v657_v41  ;;  %735 = vmatprep.mubr.f32.mxu1 %v665_v42 }
  0x2d   : > { %730 = vmatmul.mubr.f32.gmra.mrb[2].mxu0 %v658_v43  ;;  %736 = vmatmul.mubr.f32.gmra.mrb[2].mxu1 %v666_v44 }
  0x92   : > { %v475_v45 = vpop.permute.xlu1 %474  ;;  %v465_v46 = vpop.permute.xlu0 %464 }
  0x96   : > { %v480_v47 = vpop.permute.xlu1 %479  ;;  %v470_v48 = vpop.permute.xlu0 %469 }
  0x9a   : > { %v490_v49 = vpop.permute.xlu1 %489  ;;  %v485_v50 = vpop.permute.xlu0 %484 }
  0x9e   : > { %v500_v63 = vpop.permute.xlu1 %499  ;;  %v495_v0 = vpop.permute.xlu0 %494 }
  0xfc   : > { %v728_v51 = vpop.f32.mrb[0].mxu0  ;;  %v734_v53 = vpop.f32.mrb[0].mxu1 }
  0xfd   : > { %v503_v55 = vmul.f32 %v728_v51, %v470_v48  ;;  %v507_v56 = vmul.f32 %v734_v53, %v490_v49  ;;  %v388_v57 = vpop.f32.mrb[1].mxu0  ;;  %v408_v59 = vpop.f32.mrb[1].mxu1 }
  0xfe   : > { %v502_v61 = vmul.f32 %v465_v46, %v388_v57  ;;  %v506_v62 = vmul.f32 %v485_v50, %v408_v59 }
  0xff   : > { %v519_v1 = vadd.f32 %v511_v52, %v503_v55  ;;  %v523_v2 = vadd.f32 %v515_v54, %v507_v56 }
 0x100   : > { %v518_v3 = vadd.f32 %v510_v58, %v502_v61  ;;  %v522_v4 = vadd.f32 %v514_v60, %v506_v62  ;;  %v731_v5 = vpop.f32.mrb[2].mxu0  ;;  %v737_v7 = vpop.f32.mrb[2].mxu1 }
 0x101   : > { %v527_v9 = vmax.f32 %v519_v1, 0.0  ;;  %v531_v10 = vmax.f32 %v523_v2, 0.0  ;;  %v505_v11 = vmul.f32 %v731_v5, %v480_v47  ;;  %v509_v12 = vmul.f32 %v737_v7, %v500_v63  ;;  %v398_v13 = vpop.f32.mrb[3].mxu0  ;;  %v418_v15 = vpop.f32.mrb[3].mxu1 }
 0x102   : > { %v526_v17 = vmax.f32 %v518_v3, 0.0  ;;  %v530_v18 = vmax.f32 %v522_v4, 0.0  ;;  %v504_v19 = vmul.f32 %v475_v45, %v398_v13  ;;  %v508_v20 = vmul.f32 %v495_v0, %v418_v15 }
 0x103   : > { %535 = vst [vmem:[%s976_s20 + $0x8] sm:$0xff] %v527_v9  ;;  %539 = vst [vmem:[%s976_s20 + $0x28] sm:$0xff] %v531_v10  ;;  %v521_v21 = vadd.f32 %v513_v6, %v505_v11  ;;  %v525_v22 = vadd.f32 %v517_v8, %v509_v12 }
 0x104   : > { %534 = vst [vmem:[%s976_s20] sm:$0xff] %v526_v17  ;;  %538 = vst [vmem:[%s976_s20 + $0x20] sm:$0xff] %v530_v18  ;;  %v520_v23 = vadd.f32 %v512_v14, %v504_v19  ;;  %v524_v24 = vadd.f32 %v516_v16, %v508_v20 }
 0x105   : > { %v529_v25 = vmax.f32 %v521_v21, 0.0  ;;  %v533_v26 = vmax.f32 %v525_v22, 0.0 }
 0x106   : > { %v528_v27 = vmax.f32 %v520_v23, 0.0  ;;  %v532_v28 = vmax.f32 %v524_v24, 0.0 }
 0x107   : > { %537 = vst [vmem:[%s976_s20 + $0x18] sm:$0xff] %v529_v25  ;;  %541 = vst [vmem:[%s976_s20 + $0x38] sm:$0xff] %v533_v26 }
 0x108   : > { %536 = vst [vmem:[%s976_s20 + $0x10] sm:$0xff] %v528_v27  ;;  %540 = vst [vmem:[%s976_s20 + $0x30] sm:$0xff] %v532_v28 }
 0x109 PF: > { %s14_s17 = sadd.s32 1, %s835_s17   ;;  %s1004_s15 = smov %s831_s16 }
 0x10a   : > { %p11_p5 = scmp.ge.s32.totalorder %s14_s17, 4   ;;  %s1005_s16 = smov %s1007_s18 }
 0x10c   :  { %13 = sbr.rel (!%p11_p5) target bundleno = 2 (0x2), region = 81 }

// kernel: model_forward.11
= control target key start
LH: loop header
LB: loop body
LE: loop exit
PB: predicated region body
PF: predicated region fallthrough
CT: control target
= control target key end

     0   :  { %s855_s15 = smov 0   ;;  %s857_s16 = smov 0   ;;  %s991_s0 = inlined_call_operand.vmem [shape: bf16[128,128], index: 0, kind: input, shape index: {}]   ;;  %s992_s1 = inlined_call_operand.vmem [shape: f32[128,128], index: 1, kind: input, shape index: {}]   ;;  %s993_s2 = inlined_call_operand.vmem [shape: f32[128,128], index: 2, kind: input, shape index: {}]   ;;  %s994_s3 = inlined_call_operand.vmem [shape: f32[128,1], index: 3, kind: input, shape index: {}]   ;;  %s995_s4 = inlined_call_operand.vmem [shape: f32[128,128], index: 4, kind: output, shape index: {}]  }
   0x1   :  { %s859_s17 = smov 0  }
   0x2 LB: > { %s26_s18 = sadd.s32 1, %s823_s16  ;;  %p632_p0 = scmp.ge.s32.totalorder %s827_s17, 1  ;;  %s827_s17 = sphi %s859_s17, %s14_s17   ;;  %s823_s16 = sphi %s857_s16, %s997_s16   ;;  %s819_s15 = sphi %s855_s15, %s996_s15  }
   0x3   : > { %p28_p1 = scmp.ge.s32.totalorder %s26_s18, 2  ;;  %p202_p2 = scmp.lt.s32.totalorder %s827_s17, 3 }
   0x5   : > { %s999_s18 = smov (%p28_p1, %s26_s18), 0  ;;  %p203_p3 = pnand %p632_p0, %p202_p2 }
   0x6   : > { %v282_v0 = vld [vmem:[%s992_s1] sm:$0xff] (!%p203_p3)  ;;  %v283_v1 = vld [vmem:[%s992_s1 + $0x8] sm:$0xff] (!%p203_p3)  ;;  %v284_v2 = vld [vmem:[%s992_s1 + $0x10] sm:$0xff] (!%p203_p3)  ;;  %s633_s25 = sshll.u32 (!%p203_p3), %s819_s15, 3  ;;  %v829_v5 = vmov (!%p203_p3), 0  }
   0x7   : > { %206 = sbr.rel (%p203_p3) target bundleno = 263 (0x107), region = 36  ;;  %v730_v3 = vpack.c.bf16 (!%p203_p3), %v283_v1, %v282_v0  ;;  %v285_v4 = vld [vmem:[%s992_s1 + $0x18] sm:$0xff] (!%p203_p3)  ;;  %p242_p4 = scmp.lt.s32.totalorder (!%p203_p3), %s633_s25, 15  ;;  %804 = vset.pattern.permute.xlu1 (!%p203_p3), %v829_v5  ;;  %803 = vset.pattern.permute.xlu0 (!%p203_p3), %v829_v5  ;;  %v286_v7 = vld [vmem:[%s992_s1 + $0x20] sm:$0xff] (!%p203_p3)  ;;  %v287_v8 = vld [vmem:[%s992_s1 + $0x28] sm:$0xff] (!%p203_p3) }
   0x8   : > { %v734_v6 = vpack.c.bf16 (!%p203_p3), %v285_v4, %v284_v2  ;;  %v738_v9 = vpack.c.bf16 (!%p203_p3), %v287_v8, %v286_v7  ;;  %v288_v10 = vld [vmem:[%s992_s1 + $0x30] sm:$0xff] (!%p203_p3)  ;;  %v289_v11 = vld [vmem:[%s992_s1 + $0x38] sm:$0xff] (!%p203_p3)  ;;  %v290_v19 = vld [vmem:[%s992_s1 + $0x40] sm:$0xff] (!%p203_p3) }
   0x9   : > { %731 = vmatprep.subr.bf16.mxu0 (!%p203_p3), %v730_v3  ;;  %762 = vmatprep.subr.bf16.mxu1 (!%p203_p3), %v730_v3  ;;  %v742_v18 = vpack.c.bf16 (!%p203_p3), %v289_v11, %v288_v10  ;;  %v291_v20 = vld [vmem:[%s992_s1 + $0x48] sm:$0xff] (!%p203_p3)  ;;  %v292_v24 = vld [vmem:[%s992_s1 + $0x50] sm:$0xff] (!%p203_p3)  ;;  %v293_v25 = vld [vmem:[%s992_s1 + $0x58] sm:$0xff] (!%p203_p3) }
   0xa   : > { %733 = vmatpush3.bf16.msra.mxu0 (!%p203_p3), %v730_v3  ;;  %770 = vmatpush3.bf16.msra.mxu1 (!%p203_p3), %v730_v3  ;;  %v746_v23 = vpack.c.bf16 (!%p203_p3), %v291_v20, %v290_v19  ;;  %v750_v28 = vpack.c.bf16 (!%p203_p3), %v293_v25, %v292_v24  ;;  %v294_v29 = vld [vmem:[%s992_s1 + $0x60] sm:$0xff] (!%p203_p3)  ;;  %v295_v30 = vld [vmem:[%s992_s1 + $0x68] sm:$0xff] (!%p203_p3)  ;;  %v296_v34 = vld [vmem:[%s992_s1 + $0x70] sm:$0xff] (!%p203_p3) }
   0xb   : > { %735 = vmatprep.subr.bf16.mxu0 (!%p203_p3), %v734_v6  ;;  %763 = vmatprep.subr.bf16.mxu1 (!%p203_p3), %v734_v6  ;;  %v754_v33 = vpack.c.bf16 (!%p203_p3), %v295_v30, %v294_v29  ;;  %v297_v35 = vld [vmem:[%s992_s1 + $0x78] sm:$0xff] (!%p203_p3) }
   0xc   : > { %v758_v36 = vpack.c.bf16 (!%p203_p3), %v297_v35, %v296_v34 }
   0xe   : > { %s1001_s25 = smov (!%p242_p4, %s633_s25), 15  ;;  %737 = vmatpush3.bf16.msra.mxu0 %v734_v6  ;;  %771 = vmatpush3.bf16.msra.mxu1 %v734_v6 }
   0xf   : > { %s634_s6 = sshll.u32 %s1001_s25, 2  ;;  %s891_s7 = sshll.u32 %s1001_s25, 3  ;;  %739 = vmatprep.subr.bf16.mxu0 %v738_v9  ;;  %764 = vmatprep.subr.bf16.mxu1 %v738_v9 }
  0x10   : > { %s902_s14 = scalar_lea.vmem %s991_s0, %s634_s6  ;;  %s908_s20 = scalar_lea.vmem %s994_s3, %s891_s7 }
  0x11   : > { %v911_v12 = vld [vmem:[%s902_s14] sm:$0xff]   ;;  %v914_v13 = vld [vmem:[%s902_s14 + $0x10] sm:$0xff]   ;;  %v449_v21 = vld [vmem:[%s908_s20 + $0x18] sm:$0xff] }
  0x12   : > { %v645_v14 = vunpack.c.l.bf16 %v911_v12  ;;  %v653_v15 = vunpack.c.l.bf16 %v914_v13  ;;  %v448_v16 = vld [vmem:[%s908_s20 + $0x10] sm:$0xff]  ;;  %v446_v17 = vld [vmem:[%s908_s20] sm:$0xff]  ;;  %741 = vmatpush3.bf16.msra.mxu0 %v738_v9  ;;  %772 = vmatpush3.bf16.msra.mxu1 %v738_v9  ;;  %v447_v22 = vld [vmem:[%s908_s20 + $0x8] sm:$0xff]  ;;  %v646_v39 = vunpack.c.h.bf16 %v911_v12  ;;  %v654_v40 = vunpack.c.h.bf16 %v914_v13 }
  0x13   : > { %474 = vperm.xlu1 %804, %v448_v16   ;;  %464 = vperm.xlu0 %803, %v446_v17   ;;  %v451_v26 = vld [vmem:[%s908_s20 + $0x28] sm:$0xff]  ;;  %v450_v27 = vld [vmem:[%s908_s20 + $0x20] sm:$0xff]  ;;  %v453_v31 = vld [vmem:[%s908_s20 + $0x38] sm:$0xff] }
  0x14   : > { %718 = vmatprep.mubr.f32.mxu0 %v645_v14  ;;  %724 = vmatprep.mubr.f32.mxu1 %v653_v15  ;;  %v452_v32 = vld [vmem:[%s908_s20 + $0x30] sm:$0xff]  ;;  %v659_v37 = vld [vmem:[%s902_s14 + $0x8] sm:$0xff]   ;;  %v661_v38 = vld [vmem:[%s902_s14 + $0x18] sm:$0xff]   ;;  %s958_s14 = scalar_lea.vmem %s993_s2, %s891_s7  ;;  %s968_s20 = scalar_lea.vmem %s995_s4, %s891_s7 }
  0x15   : > { %743 = vmatprep.subr.bf16.mxu0 %v742_v18  ;;  %765 = vmatprep.subr.bf16.mxu1 %v742_v18  ;;  %v649_v41 = vunpack.c.l.bf16 %v659_v37  ;;  %v657_v42 = vunpack.c.l.bf16 %v661_v38  ;;  %v650_v43 = vunpack.c.h.bf16 %v659_v37  ;;  %v658_v44 = vunpack.c.h.bf16 %v661_v38  ;;  %v511_v52 = vld [vmem:[%s958_s14 + $0x8] sm:$0xff]  ;;  %v510_v58 = vld [vmem:[%s958_s14] sm:$0xff]  ;;  %v513_v6 = vld [vmem:[%s958_s14 + $0x18] sm:$0xff] }
  0x16   : > { %745 = vmatpush3.bf16.msra.mxu0 %v742_v18  ;;  %773 = vmatpush3.bf16.msra.mxu1 %v742_v18  ;;  %v515_v54 = vld [vmem:[%s958_s14 + $0x28] sm:$0xff]  ;;  %v514_v60 = vld [vmem:[%s958_s14 + $0x20] sm:$0xff]  ;;  %v517_v8 = vld [vmem:[%s958_s14 + $0x38] sm:$0xff] }
  0x17   : > { %479 = vperm.xlu1 %804, %v449_v21   ;;  %469 = vperm.xlu0 %803, %v447_v22   ;;  %v512_v12 = vld [vmem:[%s958_s14 + $0x10] sm:$0xff] }
  0x18   : > { %747 = vmatprep.subr.bf16.mxu0 %v746_v23  ;;  %766 = vmatprep.subr.bf16.mxu1 %v746_v23  ;;  %v516_v14 = vld [vmem:[%s958_s14 + $0x30] sm:$0xff] }
  0x1a   : > { %749 = vmatpush3.bf16.msra.mxu0 %v746_v23  ;;  %774 = vmatpush3.bf16.msra.mxu1 %v746_v23 }
  0x1b   : > { %489 = vperm.xlu1 %804, %v451_v26   ;;  %484 = vperm.xlu0 %803, %v450_v27  }
  0x1c   : > { %751 = vmatprep.subr.bf16.mxu0 %v750_v28  ;;  %767 = vmatprep.subr.bf16.mxu1 %v750_v28 }
  0x1e   : > { %753 = vmatpush3.bf16.msra.mxu0 %v750_v28  ;;  %775 = vmatpush3.bf16.msra.mxu1 %v750_v28 }
  0x1f   : > { %499 = vperm.xlu1 %804, %v453_v31   ;;  %494 = vperm.xlu0 %803, %v452_v32  }
  0x20   : > { %755 = vmatprep.subr.bf16.mxu0 %v754_v33  ;;  %768 = vmatprep.subr.bf16.mxu1 %v754_v33 }
  0x22   : > { %757 = vmatpush3.bf16.msra.mxu0 %v754_v33  ;;  %776 = vmatpush3.bf16.msra.mxu1 %v754_v33 }
  0x23   : > { %759 = vmatprep.subr.bf16.mxu0 %v758_v36  ;;  %769 = vmatprep.subr.bf16.mxu1 %v758_v36 }
  0x26   : > { %761 = vmatpush3.bf16.msra.mxu0 %v758_v36  ;;  %777 = vmatpush3.bf16.msra.mxu1 %v758_v36 }
  0x29   : > { %719 = vmatmul.mubr.f32.vlgmr.msra.gmra.mrb[0].mxu0 %v646_v39  ;;  %725 = vmatmul.mubr.f32.vlgmr.msra.gmra.mrb[0].mxu1 %v654_v40 }
  0x2a   : > { %721 = vmatprep.mubr.f32.mxu0 %v649_v41  ;;  %727 = vmatprep.mubr.f32.mxu1 %v657_v42 }
  0x2d   : > { %722 = vmatmul.mubr.f32.gmra.mrb[2].mxu0 %v650_v43  ;;  %728 = vmatmul.mubr.f32.gmra.mrb[2].mxu1 %v658_v44 }
  0x92   : > { %v475_v45 = vpop.permute.xlu1 %474  ;;  %v465_v46 = vpop.permute.xlu0 %464 }
  0x96   : > { %v480_v47 = vpop.permute.xlu1 %479  ;;  %v470_v48 = vpop.permute.xlu0 %469 }
  0x9a   : > { %v490_v49 = vpop.permute.xlu1 %489  ;;  %v485_v50 = vpop.permute.xlu0 %484 }
  0x9e   : > { %v500_v63 = vpop.permute.xlu1 %499  ;;  %v495_v0 = vpop.permute.xlu0 %494 }
  0xfc   : > { %v720_v51 = vpop.f32.mrb[0].mxu0  ;;  %v726_v53 = vpop.f32.mrb[0].mxu1 }
  0xfd   : > { %v503_v55 = vmul.f32 %v720_v51, %v470_v48  ;;  %v507_v56 = vmul.f32 %v726_v53, %v490_v49  ;;  %v388_v57 = vpop.f32.mrb[1].mxu0  ;;  %v408_v59 = vpop.f32.mrb[1].mxu1 }
  0xfe   : > { %v502_v61 = vmul.f32 %v465_v46, %v388_v57  ;;  %v506_v62 = vmul.f32 %v485_v50, %v408_v59 }
  0xff   : > { %v519_v1 = vadd.f32 %v511_v52, %v503_v55  ;;  %v523_v2 = vadd.f32 %v515_v54, %v507_v56 }
 0x100   : > { %v518_v3 = vadd.f32 %v510_v58, %v502_v61  ;;  %v522_v4 = vadd.f32 %v514_v60, %v506_v62  ;;  %v723_v5 = vpop.f32.mrb[2].mxu0  ;;  %v729_v7 = vpop.f32.mrb[2].mxu1 }
 0x101   : > { %527 = vst [vmem:[%s968_s20 + $0x8] sm:$0xff] %v519_v1  ;;  %531 = vst [vmem:[%s968_s20 + $0x28] sm:$0xff] %v523_v2  ;;  %v505_v9 = vmul.f32 %v723_v5, %v480_v47  ;;  %v509_v10 = vmul.f32 %v729_v7, %v500_v63  ;;  %v398_v11 = vpop.f32.mrb[3].mxu0  ;;  %v418_v13 = vpop.f32.mrb[3].mxu1 }
 0x102   : > { %526 = vst [vmem:[%s968_s20] sm:$0xff] %v518_v3  ;;  %530 = vst [vmem:[%s968_s20 + $0x20] sm:$0xff] %v522_v4  ;;  %v504_v15 = vmul.f32 %v475_v45, %v398_v11  ;;  %v508_v16 = vmul.f32 %v495_v0, %v418_v13 }
 0x103   : > { %v521_v17 = vadd.f32 %v513_v6, %v505_v9  ;;  %v525_v18 = vadd.f32 %v517_v8, %v509_v10 }
 0x104   : > { %v520_v19 = vadd.f32 %v512_v12, %v504_v15  ;;  %v524_v20 = vadd.f32 %v516_v14, %v508_v16 }
 0x105   : > { %529 = vst [vmem:[%s968_s20 + $0x18] sm:$0xff] %v521_v17  ;;  %533 = vst [vmem:[%s968_s20 + $0x38] sm:$0xff] %v525_v18 }
 0x106   : > { %528 = vst [vmem:[%s968_s20 + $0x10] sm:$0xff] %v520_v19  ;;  %532 = vst [vmem:[%s968_s20 + $0x30] sm:$0xff] %v524_v20 }
 0x107 PF: > { %s14_s17 = sadd.s32 1, %s827_s17   ;;  %s996_s15 = smov %s823_s16 }
 0x108   : > { %p11_p5 = scmp.ge.s32.totalorder %s14_s17, 4   ;;  %s997_s16 = smov %s999_s18 }
 0x10a   :  { %13 = sbr.rel (!%p11_p5) target bundleno = 2 (0x2), region = 81 }

</bundles_post_ra>
